<compile_context>
chip_gen: v6e
topology: v6e:2x2x1
jax: 0.10.0
libtpu: 0.0.40
codegen_flags: <defaults>
</compile_context>

<pallas_src>
import jax
import jax.numpy as jnp
from jax import lax
from jax.experimental import pallas as pl
from jax.experimental.pallas import tpu as pltpu


def _decoder_emb_kernel(lt_ref, table_ref, pos_ref, out_ref):
    """One grid step: embed T = TB*S tokens.

    lt_ref    : (T, 1) int32  combined row id = label * (n_times+1) + time_idx
    table_ref : (Vl*Vt, D) f32 cross-product table, row = (label_emb+time_emb)/3
    pos_ref   : (S, D) f32 positional table, pre-scaled by 1/3
    out_ref   : (TB, S, D)
    """
    TB, S, D = out_ref.shape
    T = lt_ref.shape[0]
    V = table_ref.shape[0]

    lt = lt_ref[...]                                      # (T, 1) int32
    col = lax.broadcasted_iota(jnp.int32, (T, V), 1)
    onehot = (col == lt).astype(jnp.float32)              # exactly one 1 per row

    # One MXU matmul performs the (label + time)/3 gather for all T tokens.
    # HIGHEST precision keeps the f32 table rows exact (default precision
    # could demote to a single bf16 pass and drift from the reference).
    dec = jnp.dot(onehot, table_ref[...],
                  preferred_element_type=jnp.float32,
                  precision=lax.Precision.HIGHEST)        # (T, D)

    # Direct positional add: cost is one VPU add per output element and is
    # independent of max_seq.  Blocks start on S boundaries, so the (T, D)
    # block is exactly (TB, S, D) token-major.
    dec = dec.reshape(TB, S, D) + pos_ref[...][None, :, :]
    out_ref[...] = dec.astype(out_ref.dtype)              # lane-dense when D % 128 == 0


def _round_up(x, m):
    return -(-x // m) * m


def _hw_params():
    """(vmem_capacity_bytes, num_tensorcores) for the local device, with safe fallbacks."""
    vmem_cap = 64 << 20            # conservative default: valid on every current TPU
    num_tc = 1
    try:
        vmem_cap = int(pltpu.get_tpu_info().vmem_capacity_bytes)
    except Exception:
        pass
    try:
        kind = jax.devices()[0].device_kind.lower()
        if "v7" in kind or "7x" in kind:
            num_tc = 2             # v7x: 2 TensorCores per chip
    except Exception:
        pass
    return vmem_cap, num_tc


def _choose_block_batch(batch, seq, dim, elem_bytes, *, num_tc):
    """Pick TB (batch items per grid step).

    Constraints:
      * TB divides B (clean tiling),
      * (TB * S) % 8 == 0 (sublane tiling of the (T, 1) id block) unless TB == B,
      * output block ~6 MiB on single-TC chips (v5e/v6e, 128 MiB VMEM) and
        ~3 MiB on dual-TC chips (v7x, 64 MiB VMEM),
      * on dual-TC chips prefer a grid-step count that is a multiple of the
        TensorCore count so dimension_semantics=("parallel",) load-balances.
    """
    target = (3 << 20) if num_tc >= 2 else (6 << 20)
    per_item = max(1, seq * dim * elem_bytes)
    cap = max(1, min(batch, target // per_item))

    def ok(tb, need_even_grid):
        if batch % tb != 0:
            return False
        if tb != batch and (tb * seq) % 8 != 0:
            return False
        if need_even_grid and (batch // tb) % num_tc != 0:
            return False
        return True

    need_even = num_tc >= 2 and batch >= num_tc
    for tb in range(cap, 0, -1):
        if ok(tb, need_even):
            return tb
    for tb in range(cap, 0, -1):
        if ok(tb, False):
            return tb
    return batch  # fallback: single full-array block (always a legal BlockSpec)


def decoder_embedding(label, time_idx, label_table, time_table, pos_table,
                      *, block_batch=None, out_dtype=jnp.float32):
    """(label_embed[label] + time_embed[time_idx] + position_embed[arange(S)]) / 3.

    Production call sites should pass out_dtype=jnp.bfloat16: the kernel is
    HBM-write-bound, so halving output bytes is ~2x wall time; accumulation
    stays f32 and only the final store casts.
    """
    B, S = label.shape
    Vl, D = label_table.shape
    Vt = time_table.shape[0]
    assert time_idx.shape == (B, S)
    assert pos_table.shape == (S, D)

    vmem_cap, num_tc = _hw_params()
    elem_bytes = jnp.dtype(out_dtype).itemsize
    TB = block_batch or _choose_block_batch(B, S, D, elem_bytes, num_tc=num_tc)
    T = TB * S                       # tokens per grid step
    grid = (B // TB,)

    # Cross-product table: row (l*Vt + t) = (label_emb[l] + time_emb[t]) / 3.
    # Keeps the one-hot at ONE compare per element and the MXU K-dim at Vl*Vt,
    # independent of max_seq.  Fine while Vl*Vt stays small (Vl == 4); for
    # very large n_times, split back into a [label; time] concat table.
    sum_lt = ((label_table.astype(jnp.float32)[:, None, :]
               + time_table.astype(jnp.float32)[None, :, :]) * (1.0 / 3.0)
              ).reshape(Vl * Vt, D)
    pos_scaled = pos_table.astype(jnp.float32) * (1.0 / 3.0)

    # One combined id per token, token-major (B*S, 1).  Ids are assumed
    # in-range (as in the PyTorch module); out-of-range ids would alias rows.
    lt_id = (label.astype(jnp.int32) * Vt
             + time_idx.astype(jnp.int32)).reshape(B * S, 1)

    # Explicit VMEM budget: lane-padded (T,1) id block, resident tables and
    # output block (all counted double-buffered) + the (T, V) one-hot and
    # (T, D) f32 intermediates, plus headroom; capped at 80% of physical VMEM.
    V = Vl * Vt
    id_block = _round_up(T, 8) * 128 * 4                      # 128-lane padded int32
    tbl_bytes = _round_up(V, 8) * _round_up(D, 128) * 4
    pos_bytes = _round_up(S, 8) * _round_up(D, 128) * 4
    out_block = TB * _round_up(S, 8) * _round_up(D, 128) * elem_bytes
    interm = T * (_round_up(V, 128) + 2 * _round_up(D, 128)) * 4
    est = 2 * (id_block + tbl_bytes + pos_bytes + out_block) + interm
    vmem_limit = min(max(est + (8 << 20), 32 << 20), int(0.8 * vmem_cap))
    vmem_limit = min(max(vmem_limit, est), vmem_cap)

    out = pl.pallas_call(
        _decoder_emb_kernel,
        out_shape=jax.ShapeDtypeStruct((B, S, D), out_dtype),
        grid_spec=pltpu.PrefetchScalarGridSpec(
            num_scalar_prefetch=0,
            grid=grid,
            in_specs=[
                pl.BlockSpec((T, 1), lambda b: (b, 0)),           # combined ids
                pl.BlockSpec((Vl * Vt, D), lambda b: (0, 0)),     # resident sum_lt
                pl.BlockSpec((S, D), lambda b: (0, 0)),           # resident pos/3
            ],
            out_specs=pl.BlockSpec((TB, S, D), lambda b: (b, 0, 0)),
        ),
        compiler_params=pltpu.CompilerParams(
            dimension_semantics=("parallel",),
            vmem_limit_bytes=int(vmem_limit),
        ),
    )(lt_id, sum_lt, pos_scaled)

    return out


def _reference(label, time_idx, label_table, time_table, pos_table):
    lab = jnp.take(label_table, label, axis=0)        # (B, S, D)
    tim = jnp.take(time_table, time_idx, axis=0)      # (B, S, D)
    pos = pos_table[None, :, :]                       # (1, S, D)
    return (lab + tim + pos) / 3.0


if __name__ == "__main__":
    # Small shapes consistent with the module; emb_dim is a multiple of 128
    # (realistic SAINT width) so the output store path is lane-dense.
    B, max_seq, emb_dim, n_times = 8, 8, 128, 16

    key = jax.random.PRNGKey(0)
    k1, k2, k3, k4, k5 = jax.random.split(key, 5)

    # nn.Embedding ~ N(0,1); padding_idx=0 rows zeroed.
    label_table = jax.random.normal(k1, (4, emb_dim), dtype=jnp.float32)
    label_table = label_table.at[0].set(0.0)
    time_table = jax.random.normal(k2, (n_times + 1, emb_dim), dtype=jnp.float32)
    time_table = time_table.at[0].set(0.0)
    pos_table = jax.random.normal(k3, (max_seq, emb_dim), dtype=jnp.float32)

    # inputs: label in [0, 3], time_idx in [0, n_times]
    label = jax.random.randint(k4, (B, max_seq), 0, 4, dtype=jnp.int32)
    time_idx = jax.random.randint(k5, (B, max_seq), 0, n_times + 1, dtype=jnp.int32)

    out = decoder_embedding(label, time_idx, label_table, time_table, pos_table)
    out = jax.block_until_ready(out)

    ref = _reference(label, time_idx, label_table, time_table, pos_table)
    assert out.shape == (B, max_seq, emb_dim)
    assert jnp.allclose(out, ref, atol=1e-5, rtol=1e-5), "mismatch vs reference"

    print("KERNEL_OK")
</pallas_src>

<mosaic_0001>
module attributes {stable_mosaic.version = 11 : i64} {
  func.func @_decoder_emb_kernel(%arg0: i32, %arg1: memref<64x1xi32, #tpu.memory_space<vmem>>, %arg2: memref<68x128xf32, #tpu.memory_space<vmem>>, %arg3: memref<8x128xf32, #tpu.memory_space<vmem>>, %arg4: memref<8x8x128xf32, #tpu.memory_space<vmem>>) attributes {dimension_semantics = [#tpu.dimension_semantics<parallel>], iteration_bounds = array<i64: 1>, scalar_prefetch = 0 : i64, scratch_operands = 0 : i64, tpu.core_type = #tpu.core_type<tc>, window_params = [{transform_indices = @transform_0, window_bounds = array<i64: 64, 1>}, {pipeline_mode = #tpu.pipeline_mode<synchronous>, transform_indices = @transform_1, window_bounds = array<i64: 68, 128>}, {pipeline_mode = #tpu.pipeline_mode<synchronous>, transform_indices = @transform_2, window_bounds = array<i64: 8, 128>}, {transform_indices = @transform_3, window_bounds = array<i64: 8, 8, 128>}]} {
    %c0 = arith.constant 0 : index
    %c0_0 = arith.constant 0 : index
    %0 = vector.load %arg1[%c0, %c0_0] : memref<64x1xi32, #tpu.memory_space<vmem>>, vector<64x1xi32>
    %1 = tpu.iota {dimensions = array<i32: 1>} : vector<64x68xi32>
    %2 = vector.broadcast %0 : vector<64x1xi32> to vector<64x68xi32>
    %3 = arith.cmpi eq, %1, %2 : vector<64x68xi32>
    %4 = arith.extui %3 : vector<64x68xi1> to vector<64x68xi32>
    %5 = arith.sitofp %4 : vector<64x68xi32> to vector<64x68xf32>
    %c0_1 = arith.constant 0 : index
    %c0_2 = arith.constant 0 : index
    %6 = vector.load %arg2[%c0_1, %c0_2] : memref<68x128xf32, #tpu.memory_space<vmem>>, vector<68x128xf32>
    %cst = arith.constant dense<0.000000e+00> : vector<64x128xf32>
    %7 = tpu.matmul %5, %6, %cst {dimension_numbers = #tpu.dot_dimension_numbers<[1], [0], [0], [1], [0, 0, 1, 1], [], []>, precision = #tpu.contract_precision<fp32>} : vector<64x68xf32>, vector<68x128xf32>, vector<64x128xf32> -> vector<64x128xf32>
    %8 = vector.shape_cast %7 : vector<64x128xf32> to vector<8x8x128xf32>
    %c0_3 = arith.constant 0 : index
    %c0_4 = arith.constant 0 : index
    %9 = vector.load %arg3[%c0_3, %c0_4] : memref<8x128xf32, #tpu.memory_space<vmem>>, vector<8x128xf32>
    %10 = vector.shape_cast %9 : vector<8x128xf32> to vector<1x8x128xf32>
    %11 = vector.broadcast %10 : vector<1x8x128xf32> to vector<8x8x128xf32>
    %12 = arith.addf %8, %11 : vector<8x8x128xf32>
    %c0_5 = arith.constant 0 : index
    %c0_6 = arith.constant 0 : index
    %c0_7 = arith.constant 0 : index
    %13 = vector.load %arg4[%c0_5, %c0_6, %c0_7] : memref<8x8x128xf32, #tpu.memory_space<vmem>>, vector<8x8x128xf32>
    tpu.vector_store %arg4[%c0_5, %c0_6, %c0_7], %12 {strides = array<i32>} : memref<8x8x128xf32, #tpu.memory_space<vmem>>, vector<8x8x128xf32>,
    return
  }
  func.func @transform_0(%arg0: i32) -> (i32, i32) {
    %c0_i32 = arith.constant 0 : i32
    %c0_i32_0 = arith.constant 0 : i32
    return %arg0, %c0_i32 : i32, i32
  }
  func.func @transform_1(%arg0: i32) -> (i32, i32) {
    %c0_i32 = arith.constant 0 : i32
    %c0_i32_0 = arith.constant 0 : i32
    %c0_i32_1 = arith.constant 0 : i32
    return %c0_i32, %c0_i32_0 : i32, i32
  }
  func.func @transform_2(%arg0: i32) -> (i32, i32) {
    %c0_i32 = arith.constant 0 : i32
    %c0_i32_0 = arith.constant 0 : i32
    %c0_i32_1 = arith.constant 0 : i32
    return %c0_i32, %c0_i32_0 : i32, i32
  }
  func.func @transform_3(%arg0: i32) -> (i32, i32, i32) {
    %c0_i32 = arith.constant 0 : i32
    %c0_i32_0 = arith.constant 0 : i32
    %c0_i32_1 = arith.constant 0 : i32
    return %arg0, %c0_i32, %c0_i32_0 : i32, i32, i32
  }
}

</mosaic_0001>

<bundles_post_ra>
// kernel: tpu_custom_call.1
= control target key start
LH: loop header
LB: loop body
LE: loop exit
PB: predicated region body
PF: predicated region fallthrough
CT: control target
= control target key end

     0   :  { %8 = vsyncpa [#allocation3], 0  ;;  %s1760_s0 = inlined_call_operand.vmem [shape: s32[64,1], index: 0, kind: input, shape index: {}]   ;;  %s1761_s1 = inlined_call_operand.hbm [shape: f32[68,128], index: 1, kind: input, shape index: {}]   ;;  %s1762_s2 = inlined_call_operand.vmem [shape: f32[8,128], index: 2, kind: input, shape index: {}]   ;;  %s1763_s3 = inlined_call_operand.hbm [shape: f32[8,8,128], index: 3, kind: output, shape index: {}]  }
   0x1   :  { %9 = vsyncpa [#allocation4], 0  ;;  %s1376_s12 = smov [#allocation2]  }
   0x2   :  { %s17_s13 = sshll.u32 %s1376_s12, 4  ;;  %s18_s13 = int_to_ptr.vmem [resolvable:$true] %s17_s13 }
   0x3   :  { %s1340_s14 = scalar_lea.vmem %s18_s13, 1152  ;;  %p1345_p1 = scmp.lt.s32.totalorder %s18_s13, %s18_s13 }
   0x4   :  { %p1341_p0 = scmp.ne.s32.totalorder %s18_s13, %s1340_s14  ;;  %p1346_p2 = scmp.lt.s32.totalorder %s1340_s14, %s1340_s14 }
   0x6   :  { %p1347_p3 = por %p1346_p2, %p1345_p1 }
   0x8   :  { %p1348_p4 = pnand %p1347_p3, %p1341_p0 }
   0xa   :  { %1351 = shalt.err (!%p1348_p4)
}
   0xb   :  { %s1377_s15 = smov 128   ;;  %s1378_s16 = smov 8  }
   0xc   :  { %23 = dma.hbm_to_vmem [thread:$0]  %s1761_s1, 1152, %s18_s13, [#allocation3], %s1377_s15, %s1377_s15, %s1378_s16  }
   0xd   :  { %1372 = dma.done.wait [#allocation3], 1152  }
   0xe   :  { %1373 = vsyncadd [#allocation3], 4294966144  ;;  %v1379_v0 = vmov 0   ;;  %v31_v1 = vld [vmem:[%s1760_s0 + $0x10] sm:$0xff]  ;;  %v29_v2 = vld [vmem:[%s1760_s0] sm:$0xff]  ;;  %vm121_vm0 = vcmask 1043456  }
   0xf   :  { %1331 = vset.pattern.permute.xlu1 %v1379_v0  ;;  %1330 = vset.pattern.permute.xlu0 %v1379_v0  ;;  %v32_v3 = vld [vmem:[%s1760_s0 + $0x18] sm:$0xff]  ;;  %v30_v4 = vld [vmem:[%s1760_s0 + $0x8] sm:$0xff]  ;;  %v95_v5 = vld [vmem:[#allocation2 + $0x40] sm:$0xf]  ;;  %v37_v0 = vlaneseq  ;;  %vm96_vm1 = vcmask 556032  }
  0x10   :  { %46 = vperm.xlu1 %1331, %v31_v1   ;;  %40 = vperm.xlu0 %1330, %v29_v2   ;;  %v123_v6 = vsel %vm121_vm0, %v95_v5, 0  ;;  %v94_v7 = vld [vmem:[#allocation2 + $0x38] sm:$0xff]  ;;  %v93_v8 = vld [vmem:[#allocation2 + $0x30] sm:$0xff]  ;;  %v92_v9 = vld [vmem:[#allocation2 + $0x28] sm:$0xff] }
  0x11   :  { %v1420_v10 = vand.u32 4294901760, %v123_v6  ;;  %v1422_v11 = vand.u32 4294901760, %v94_v7  ;;  %v1424_v12 = vand.u32 4294901760, %v93_v8  ;;  %v1426_v13 = vand.u32 4294901760, %v92_v9  ;;  %v91_v14 = vld [vmem:[#allocation2 + $0x20] sm:$0xff]  ;;  %v90_v15 = vld [vmem:[#allocation2 + $0x18] sm:$0xff] }
  0x12   :  { %v1428_v16 = vand.u32 4294901760, %v91_v14  ;;  %v1430_v17 = vand.u32 4294901760, %v90_v15  ;;  %v89_v18 = vld [vmem:[#allocation2 + $0x10] sm:$0xff]  ;;  %v88_v19 = vld [vmem:[#allocation2 + $0x8] sm:$0xff]  ;;  %v33_v21 = vld [vmem:[%s1760_s0 + $0x20] sm:$0xff]  ;;  %v38_v1 = vand.u32 127, %v37_v0 }
  0x13   :  { %v34_v20 = vld [vmem:[%s1760_s0 + $0x28] sm:$0xff]  ;;  %v1439_v22 = vsub.f32 %v123_v6, %v1420_v10  ;;  %v1442_v23 = vsub.f32 %v94_v7, %v1422_v11  ;;  %v1445_v24 = vsub.f32 %v93_v8, %v1424_v12  ;;  %v1448_v25 = vsub.f32 %v92_v9, %v1426_v13  ;;  %1144 = vmatprep.subr.mxu0 %v1420_v10  ;;  %v36_v35 = vld [vmem:[%s1760_s0 + $0x38] sm:$0xff]  ;;  %v35_v36 = vld [vmem:[%s1760_s0 + $0x30] sm:$0xff] }
  0x14   :  { %49 = vperm.xlu1 %1331, %v32_v3   ;;  %43 = vperm.xlu0 %1330, %v30_v4   ;;  %v1452_v26 = vsub.f32 %v91_v14, %v1428_v16  ;;  %v1456_v27 = vsub.f32 %v90_v15, %v1430_v17  ;;  %v1458_v28 = vand.u32 4294901760, %v89_v18  ;;  %v1460_v29 = vand.u32 4294901760, %v88_v19  ;;  %v87_v42 = vld [vmem:[#allocation2] sm:$0xff] }
  0x15   :  { %1145 = vmatpush3.msra.mxu0 %v1420_v10  ;;  %v1463_v30 = vand.u32 4294901760, %v1439_v22  ;;  %v1466_v31 = vand.u32 4294901760, %v1442_v23  ;;  %v1469_v32 = vand.u32 4294901760, %v1445_v24  ;;  %v1472_v33 = vand.u32 4294901760, %v1448_v25 }
  0x16   :  { %1146 = vmatprep.subr.mxu0 %v1422_v11  ;;  %v1476_v34 = vand.u32 4294901760, %v1452_v26  ;;  %v1492_v40 = vsub.f32 %v89_v18, %v1458_v28  ;;  %v1495_v41 = vand.u32 4294901760, %v1456_v27  ;;  %v1502_v46 = vsub.f32 %v88_v19, %v1460_v29 }
  0x17   :  { %v297_v37 = vsub.f32 %v1439_v22, %v1463_v30  ;;  %v304_v38 = vsub.f32 %v1442_v23, %v1466_v31  ;;  %v311_v39 = vsub.f32 %v1445_v24, %v1469_v32  ;;  %1147 = vmatpush3.msra.mxu0 %v1422_v11  ;;  %v318_v45 = vsub.f32 %v1448_v25, %v1472_v33 }
  0x18   :  { %55 = vperm.xlu1 %1331, %v34_v20   ;;  %52 = vperm.xlu0 %1330, %v33_v21   ;;  %v325_v48 = vsub.f32 %v1452_v26, %v1476_v34  ;;  %v1507_v49 = vand.u32 4294901760, %v1492_v40  ;;  %v1510_v50 = vand.u32 4294901760, %v87_v42  ;;  %v332_v52 = vsub.f32 %v1456_v27, %v1495_v41 }
  0x19   :  { %1148 = vmatprep.subr.mxu0 %v1424_v12  ;;  %v298_v43 = vand.u32 4294901760, %v297_v37  ;;  %v305_v44 = vand.u32 4294901760, %v304_v38  ;;  %v312_v47 = vand.u32 4294901760, %v311_v39  ;;  %v319_v51 = vand.u32 4294901760, %v318_v45 }
  0x1a   :  { %1149 = vmatpush3.msra.mxu0 %v1424_v12  ;;  %v1516_v53 = vand.u32 4294901760, %v1502_v46  ;;  %v1519_v54 = vsub.f32 %v87_v42, %v1510_v50  ;;  %v326_v55 = vand.u32 4294901760, %v325_v48  ;;  %v339_v56 = vsub.f32 %v1492_v40, %v1507_v49 }
  0x1b   :  { %1174 = vmatprep.subr.mxu1 %v298_v43  ;;  %1150 = vmatprep.subr.mxu0 %v1426_v13  ;;  %v333_v58 = vand.u32 4294901760, %v332_v52  ;;  %v1380_v4 = vmov 0.0  }
  0x1c   :  { %61 = vperm.xlu1 %1331, %v36_v35   ;;  %58 = vperm.xlu0 %1330, %v35_v36   ;;  %v1526_v57 = vand.u32 4294901760, %v1519_v54  ;;  %v346_v59 = vsub.f32 %v1502_v46, %v1516_v53  ;;  %v340_v60 = vand.u32 4294901760, %v339_v56 }
  0x1d   :  { %1175 = vmatpush3.msra.mxu1 %v298_v43  ;;  %1151 = vmatpush3.msra.mxu0 %v1426_v13 }
  0x1e   :  { %1176 = vmatprep.subr.mxu1 %v305_v44  ;;  %1152 = vmatprep.subr.mxu0 %v1428_v16  ;;  %v353_v61 = vsub.f32 %v1519_v54, %v1526_v57  ;;  %v347_v62 = vand.u32 4294901760, %v346_v59 }
  0x1f   :  { %1177 = vmatpush3.msra.mxu1 %v305_v44  ;;  %1153 = vmatpush3.msra.mxu0 %v1428_v16 }
  0x20   :  { %1178 = vmatprep.subr.mxu1 %v312_v47  ;;  %1154 = vmatprep.subr.mxu0 %v1430_v17  ;;  %v354_v63 = vand.u32 4294901760, %v353_v61 }
  0x21   :  { %1179 = vmatpush3.msra.mxu1 %v312_v47  ;;  %1155 = vmatpush3.msra.mxu0 %v1430_v17 }
  0x22   :  { %1180 = vmatprep.subr.mxu1 %v319_v51  ;;  %1156 = vmatprep.subr.mxu0 %v1458_v28 }
  0x23   :  { %1181 = vmatpush3.msra.mxu1 %v319_v51  ;;  %1157 = vmatpush3.msra.mxu0 %v1458_v28 }
  0x24   :  { %1182 = vmatprep.subr.mxu1 %v326_v55  ;;  %1158 = vmatprep.subr.mxu0 %v1460_v29 }
  0x25   :  { %1183 = vmatpush3.msra.mxu1 %v326_v55  ;;  %1159 = vmatpush3.msra.mxu0 %v1460_v29 }
  0x26   :  { %1184 = vmatprep.subr.mxu1 %v333_v58  ;;  %1160 = vmatprep.subr.mxu0 %v1510_v50 }
  0x27   :  { %1185 = vmatpush3.msra.mxu1 %v333_v58  ;;  %1161 = vmatpush3.msra.mxu0 %v1510_v50 }
  0x28   :  { %1186 = vmatprep.subr.mxu1 %v340_v60  ;;  %1204 = vmatprep.subr.mxu0 %v1439_v22 }
  0x29   :  { %1187 = vmatpush3.msra.mxu1 %v340_v60 }
  0x2a   :  { %1188 = vmatprep.subr.mxu1 %v347_v62 }
  0x2b   :  { %1189 = vmatpush3.msra.mxu1 %v347_v62 }
  0x2c   :  { %1190 = vmatprep.subr.mxu1 %v354_v63 }
  0x2d   :  { %1191 = vmatpush3.msra.mxu1 %v354_v63 }
  0x2e   :  { %1234 = vmatprep.subr.mxu1 %v1420_v10 }
  0x8b   :  { %v47_v2 = vpop.permute.xlu1 %46  ;;  %v41_v3 = vpop.permute.xlu0 %40 }
  0x8c   :  { %vm65_vm2 = vcmp.eq.s32.totalorder %v38_v1, %v47_v2  ;;  %vm63_vm3 = vcmp.eq.s32.totalorder %v38_v1, %v41_v3 }
  0x8d   :  { %v1542_v5 = vsel %vm65_vm2, 1.0, %v1380_v4  ;;  %v1544_v6 = vsel %vm63_vm3, 1.0, %v1380_v4 }
  0x8e   :  { %v104_v7 = vsel %vm96_vm1, %v1542_v5, 0  ;;  %1192 = vmatprep.mubr.msk.f32.mxu1 %vm96_vm1, %v1544_v6  ;;  %v98_v8 = vsel %vm96_vm1, %v1544_v6, 0 }
  0x8f   :  { %v1552_v9 = vsub.f32 %v104_v7, %v104_v7  ;;  %v50_v14 = vpop.permute.xlu1 %49  ;;  %v44_v15 = vpop.permute.xlu0 %43  ;;  %v1554_v18 = vsub.f32 %v98_v8, %v98_v8 }
  0x90   :  { %vm66_vm4 = vcmp.eq.s32.totalorder %v38_v1, %v50_v14  ;;  %vm64_vm5 = vcmp.eq.s32.totalorder %v38_v1, %v44_v15 }
  0x91   :  { %v1556_v19 = vsel %vm66_vm4, 1.0, %v1380_v4  ;;  %v1558_v20 = vsel %vm64_vm5, 1.0, %v1380_v4  ;;  %v201_v21 = vand.u32 4294901760, %v1554_v18  ;;  %v221_v35 = vand.u32 4294901760, %v1552_v9 }
  0x92   :  { %v107_v36 = vsel %vm96_vm1, %v1556_v19, 0  ;;  %v101_v37 = vsel %vm96_vm1, %v1558_v20, 0  ;;  %1193 = vmatmul.mubr.msk.f32.vlgmr.msra.gmra.mxu1 %vm96_vm1, %v1558_v20 }
  0x93   :  { %v1568_v38 = vsub.f32 %v107_v36, %v107_v36  ;;  %v1570_v39 = vsub.f32 %v101_v37, %v101_v37  ;;  %1235 = vmatpush3.msra.mxu1 %v1420_v10  ;;  %v56_v42 = vpop.permute.xlu1 %55  ;;  %v53_v43 = vpop.permute.xlu0 %52  ;;  %1195 = vmatprep.mubr.msk.f32.mxu1 %vm96_vm1, %v1542_v5  ;;  %v202_v44 = vsub.f32 %v1554_v18, %v201_v21 }
  0x94   :  { %vm68_vm6 = vcmp.eq.s32.totalorder %v38_v1, %v56_v42  ;;  %1236 = vmatprep.subr.mxu1 %v1422_v11  ;;  %vm67_vm7 = vcmp.eq.s32.totalorder %v38_v1, %v53_v43  ;;  %v222_v45 = vsub.f32 %v1552_v9, %v221_v35 }
  0x95   :  { %v1582_v47 = vsel %vm68_vm6, 1.0, %v1380_v4  ;;  %v1584_v48 = vsel %vm67_vm7, 1.0, %v1380_v4  ;;  %1237 = vmatpush3.msra.mxu1 %v1422_v11  ;;  %v203_v51 = vand.u32 4294901760, %v202_v44  ;;  %v211_v52 = vand.u32 4294901760, %v1570_v39 }
  0x96   :  { %v113_v55 = vsel %vm96_vm1, %v1582_v47, 0  ;;  %v110_v56 = vsel %vm96_vm1, %v1584_v48, 0  ;;  %1238 = vmatprep.subr.mxu1 %v1424_v12  ;;  %1196 = vmatmul.mubr.msk.f32.gmra.mxu1 %vm96_vm1, %v1556_v19  ;;  %v231_v62 = vand.u32 4294901760, %v1568_v38  ;;  %v223_v0 = vand.u32 4294901760, %v222_v45 }
  0x97   :  { %v1595_v58 = vsub.f32 %v110_v56, %v110_v56  ;;  %1239 = vmatpush3.msra.mxu1 %v1424_v12  ;;  %v62_v59 = vpop.permute.xlu1 %61  ;;  %1162 = vmatprep.mubr.f32.mxu0 %v203_v51  ;;  %v59_v60 = vpop.permute.xlu0 %58  ;;  %v212_v61 = vsub.f32 %v1570_v39, %v211_v52  ;;  %v1602_v63 = vsub.f32 %v113_v55, %v113_v55 }
  0x98   :  { %vm70_vm8 = vcmp.eq.s32.totalorder %v38_v1, %v62_v59  ;;  %1198 = vmatprep.mubr.msk.f32.mxu1 %vm96_vm1, %v1584_v48  ;;  %1240 = vmatprep.subr.mxu1 %v1426_v13  ;;  %vm69_vm9 = vcmp.eq.s32.totalorder %v38_v1, %v59_v60  ;;  %v232_v1 = vsub.f32 %v1568_v38, %v231_v62 }
  0x99   :  { %v1607_v2 = vsel %vm70_vm8, 1.0, %v1380_v4  ;;  %v1609_v3 = vsel %vm69_vm9, 1.0, %v1380_v4  ;;  %1241 = vmatpush3.msra.mxu1 %v1426_v13  ;;  %v213_v7 = vand.u32 4294901760, %v212_v61  ;;  %v241_v8 = vand.u32 4294901760, %v1595_v58 }
  0x9a   :  { %v116_v14 = vsel %vm96_vm1, %v1609_v3, 0  ;;  %1242 = vmatprep.subr.mxu1 %v1428_v16  ;;  %1199 = vmatmul.mubr.msk.f32.gmra.mxu1 %vm96_vm1, %v1582_v47  ;;  %v119_v36 = vsel %vm96_vm1, %v1607_v2, 0  ;;  %v251_v37 = vand.u32 4294901760, %v1602_v63  ;;  %v233_v44 = vand.u32 4294901760, %v232_v1 }
  0x9b   :  { %v1618_v15 = vsub.f32 %v116_v14, %v116_v14  ;;  %1243 = vmatpush3.msra.mxu1 %v1428_v16  ;;  %1163 = vmatmul.mubr.f32.vlgmr.msra.gmra.mxu0 %v213_v7  ;;  %v242_v4 = vsub.f32 %v1595_v58, %v241_v8  ;;  %v1635_v43 = vsub.f32 %v119_v36, %v119_v36  ;;  %v976_v36 = vld [vmem:[%s1762_s2] sm:$0xff]  ;;  %s1381_s2 = smov [#allocation5]  }
  0x9c   :  { %1201 = vmatprep.mubr.msk.f32.mxu1 %vm96_vm1, %v1609_v3  ;;  %1205 = vmatpush3.msra.mxu0 %v1439_v22  ;;  %v252_v22 = vsub.f32 %v1602_v63, %v251_v37  ;;  %s998_s8 = sshll.u32 %s1381_s2, 4  ;;  %s999_s8 = int_to_ptr.vmem [resolvable:$true] %s998_s8 }
  0x9d   :  { %1244 = vmatprep.subr.mxu1 %v1430_v17  ;;  %1165 = vmatprep.mubr.f32.mxu0 %v223_v0  ;;  %v261_v42 = vand.u32 4294901760, %v1618_v15  ;;  %v243_v45 = vand.u32 4294901760, %v242_v4  ;;  %s1352_s9 = scalar_lea.vmem %s999_s8, 1024  ;;  %p1357_p6 = scmp.lt.s32.totalorder %s999_s8, %s999_s8 }
  0x9e   :  { %1206 = vmatprep.subr.mxu0 %v1442_v23  ;;  %1245 = vmatpush3.msra.mxu1 %v1430_v17  ;;  %v253_v55 = vand.u32 4294901760, %v252_v22  ;;  %p1353_p5 = scmp.ne.s32.totalorder %s999_s8, %s1352_s9  ;;  %p1358_p7 = scmp.lt.s32.totalorder %s1352_s9, %s1352_s9 }
  0x9f   :  { %1207 = vmatpush3.msra.mxu0 %v1442_v23  ;;  %1246 = vmatprep.subr.mxu1 %v1458_v28  ;;  %v262_v51 = vsub.f32 %v1618_v15, %v261_v42  ;;  %v271_v23 = vand.u32 4294901760, %v1635_v43 }
  0xa0   :  { %1202 = vmatmul.mubr.msk.f32.gmra.mxu1 %vm96_vm1, %v1607_v2  ;;  %1208 = vmatprep.subr.mxu0 %v1445_v24  ;;  %p1359_p8 = por %p1358_p7, %p1357_p6 }
  0xa1   :  { %1247 = vmatpush3.msra.mxu1 %v1458_v28  ;;  %1166 = vmatmul.mubr.f32.gmra.mxu0 %v233_v44  ;;  %v263_v56 = vand.u32 4294901760, %v262_v51 }
  0xa2   :  { %1209 = vmatpush3.msra.mxu0 %v1445_v24  ;;  %1248 = vmatprep.subr.mxu1 %v1460_v29  ;;  %v272_v24 = vsub.f32 %v1635_v43, %v271_v23  ;;  %p1360_p9 = pnand %p1359_p8, %p1353_p5 }
  0xa3   :  { %1252 = vmatprep.mubr.f32.mxu1 %v201_v21  ;;  %1168 = vmatprep.mubr.f32.mxu0 %v243_v45 }
  0xa4   :  { %1210 = vmatprep.subr.mxu0 %v1448_v25  ;;  %1249 = vmatpush3.msra.mxu1 %v1460_v29 }
  0xa5   :  { %1211 = vmatpush3.msra.mxu0 %v1448_v25  ;;  %1250 = vmatprep.subr.mxu1 %v1510_v50  ;;  %v273_v25 = vand.u32 4294901760, %v272_v24 }
  0xa6   :  { %1212 = vmatprep.subr.mxu0 %v1452_v26  ;;  %1251 = vmatpush3.msra.mxu1 %v1510_v50 }
  0xa7   :  { %1169 = vmatmul.mubr.f32.gmra.mxu0 %v253_v55  ;;  %1253 = vmatmul.mubr.f32.vlgmr.msra.gmra.mxu1 %v211_v52 }
  0xa8   :  { %1213 = vmatpush3.msra.mxu0 %v1452_v26  ;;  %1294 = vmatprep.subr.mxu1 %v1420_v10 }
  0xa9   :  { %1171 = vmatprep.mubr.f32.mxu0 %v263_v56  ;;  %1214 = vmatprep.subr.mxu0 %v1456_v27 }
  0xaa   :  { %1255 = vmatprep.mubr.f32.mxu1 %v221_v35  ;;  %1295 = vmatpush3.msra.mxu1 %v1420_v10 }
  0xab   :  { %1215 = vmatpush3.msra.mxu0 %v1456_v27  ;;  %1296 = vmatprep.subr.mxu1 %v1422_v11 }
  0xac   :  { %1216 = vmatprep.subr.mxu0 %v1492_v40  ;;  %1297 = vmatpush3.msra.mxu1 %v1422_v11 }
  0xad   :  { %1172 = vmatmul.mubr.f32.gmra.mxu0 %v273_v25  ;;  %1256 = vmatmul.mubr.f32.gmra.mxu1 %v231_v62 }
  0xae   :  { %1217 = vmatpush3.msra.mxu0 %v1492_v40  ;;  %1298 = vmatprep.subr.mxu1 %v1424_v12 }
  0xaf   :  { %1218 = vmatprep.subr.mxu0 %v1502_v46  ;;  %1222 = vmatprep.mubr.f32.mxu0 %v1554_v18 }
  0xb0   :  { %1258 = vmatprep.mubr.f32.mxu1 %v241_v8  ;;  %1299 = vmatpush3.msra.mxu1 %v1424_v12 }
  0xb1   :  { %1219 = vmatpush3.msra.mxu0 %v1502_v46  ;;  %1300 = vmatprep.subr.mxu1 %v1426_v13 }
  0xb2   :  { %1220 = vmatprep.subr.mxu0 %v1519_v54  ;;  %1301 = vmatpush3.msra.mxu1 %v1426_v13 }
  0xb3   :  { %1221 = vmatpush3.msra.mxu0 %v1519_v54  ;;  %1259 = vmatmul.mubr.f32.gmra.mxu1 %v251_v37 }
  0xb4   :  { %1302 = vmatprep.subr.mxu1 %v1428_v16  ;;  %1223 = vmatmul.mubr.f32.vlgmr.msra.gmra.mxu0 %v1570_v39 }
  0xb5   :  { %1261 = vmatprep.mubr.f32.mxu1 %v261_v42  ;;  %1264 = vmatprep.subr.mxu0 %v1463_v30 }
  0xb6   :  { %1303 = vmatpush3.msra.mxu1 %v1428_v16  ;;  %1225 = vmatprep.mubr.f32.mxu0 %v1552_v9 }
  0xb7   :  { %1265 = vmatpush3.msra.mxu0 %v1463_v30  ;;  %1304 = vmatprep.subr.mxu1 %v1430_v17 }
  0xb8   :  { %1266 = vmatprep.subr.mxu0 %v1466_v31  ;;  %1305 = vmatpush3.msra.mxu1 %v1430_v17 }
  0xb9   :  { %1262 = vmatmul.mubr.f32.gmra.mxu1 %v271_v23  ;;  %1267 = vmatpush3.msra.mxu0 %v1466_v31 }
  0xba   :  { %1306 = vmatprep.subr.mxu1 %v1458_v28  ;;  %1226 = vmatmul.mubr.f32.gmra.mxu0 %v1568_v38 }
  0xbb   :  { %1268 = vmatprep.subr.mxu0 %v1469_v32  ;;  %1307 = vmatpush3.msra.mxu1 %v1458_v28 }
  0xbc   :  { %1312 = vmatprep.mubr.msk.f32.mxu1 %vm96_vm1, %v1544_v6  ;;  %1228 = vmatprep.mubr.f32.mxu0 %v1595_v58 }
  0xbd   :  { %1269 = vmatpush3.msra.mxu0 %v1469_v32  ;;  %1308 = vmatprep.subr.mxu1 %v1460_v29 }
  0xbe   :  { %1270 = vmatprep.subr.mxu0 %v1472_v33  ;;  %1309 = vmatpush3.msra.mxu1 %v1460_v29 }
  0xbf   :  { %1271 = vmatpush3.msra.mxu0 %v1472_v33  ;;  %1310 = vmatprep.subr.mxu1 %v1510_v50 }
  0xc0   :  { %1229 = vmatmul.mubr.f32.gmra.mxu0 %v1602_v63  ;;  %1272 = vmatprep.subr.mxu0 %v1476_v34 }
  0xc1   :  { %1311 = vmatpush3.msra.mxu1 %v1510_v50  ;;  %1231 = vmatprep.mubr.f32.mxu0 %v1618_v15 }
  0xc2   :  { %1273 = vmatpush3.msra.mxu0 %v1476_v34  ;;  %1313 = vmatmul.mubr.msk.f32.vlgmr.msra.gmra.mxu1 %vm96_vm1, %v1558_v20 }
  0xc3   :  { %1274 = vmatprep.subr.mxu0 %v1495_v41  ;;  %1315 = vmatprep.mubr.msk.f32.mxu1 %vm96_vm1, %v1542_v5 }
  0xc4   :  { %1275 = vmatpush3.msra.mxu0 %v1495_v41 }
  0xc5   :  { %1232 = vmatmul.mubr.f32.gmra.mxu0 %v1635_v43  ;;  %1276 = vmatprep.subr.mxu0 %v1507_v49 }
  0xc6   :  { %1277 = vmatpush3.msra.mxu0 %v1507_v49  ;;  %1282 = vmatprep.mubr.msk.f32.mxu0 %vm96_vm1, %v1544_v6 }
  0xc7   :  { %1316 = vmatmul.mubr.msk.f32.gmra.mxu1 %vm96_vm1, %v1556_v19  ;;  %1278 = vmatprep.subr.mxu0 %v1516_v53 }
  0xc8   :  { %1318 = vmatprep.mubr.msk.f32.mxu1 %vm96_vm1, %v1584_v48  ;;  %1279 = vmatpush3.msra.mxu0 %v1516_v53 }
  0xc9   :  { %1280 = vmatprep.subr.mxu0 %v1526_v57 }
  0xca   :  { %1281 = vmatpush3.msra.mxu0 %v1526_v57 }
  0xcb   :  { %1319 = vmatmul.mubr.msk.f32.gmra.mxu1 %vm96_vm1, %v1582_v47  ;;  %1283 = vmatmul.mubr.msk.f32.vlgmr.msra.gmra.mxu0 %vm96_vm1, %v1558_v20 }
  0xcc   :  { %1321 = vmatprep.mubr.msk.f32.mxu1 %vm96_vm1, %v1609_v3  ;;  %1285 = vmatprep.mubr.msk.f32.mxu0 %vm96_vm1, %v1542_v5 }
  0xcf   :  { %1322 = vmatmul.mubr.msk.f32.gmra.mxu1 %vm96_vm1, %v1607_v2  ;;  %1286 = vmatmul.mubr.msk.f32.gmra.mxu0 %vm96_vm1, %v1556_v19 }
  0xd0   :  { %1288 = vmatprep.mubr.msk.f32.mxu0 %vm96_vm1, %v1584_v48 }
  0xd3   :  { %1289 = vmatmul.mubr.msk.f32.gmra.mxu0 %vm96_vm1, %v1582_v47 }
  0xd4   :  { %1291 = vmatprep.mubr.msk.f32.mxu0 %vm96_vm1, %v1609_v3 }
  0xd7   :  { %1292 = vmatmul.mubr.msk.f32.gmra.mxu0 %vm96_vm1, %v1607_v2 }
 0x152   :  { %v1194_v10 = vpop.f32.mrf.mxu1 }
 0x154   :  { %v391_v11 = vpop.f32.mrf.mxu1 }
 0x156   :  { %v1197_v12 = vpop.f32.mrf.mxu1 }
 0x158   :  { %v403_v13 = vpop.f32.mrf.mxu1 }
 0x15a   :  { %v1200_v16 = vpop.f32.mrf.mxu1 }
 0x15b   :  { %v1164_v17 = vpop.f32.mrf.mxu0 }
 0x15c   :  { %v415_v26 = vpop.f32.mrf.mxu1  ;;  %v398_v38 = vadd.f32 %v1194_v10, %v1164_v17 }
 0x15d   :  { %v205_v27 = vpop.f32.mrf.mxu0 }
 0x15e   :  { %v392_v48 = vadd.f32 %v391_v11, %v205_v27 }
 0x160   :  { %v1203_v28 = vpop.f32.mrf.mxu1 }
 0x161   :  { %v1167_v29 = vpop.f32.mrf.mxu0 }
 0x162   :  { %v427_v30 = vpop.f32.mrf.mxu1  ;;  %v410_v59 = vadd.f32 %v1197_v12, %v1167_v29 }
 0x163   :  { %v225_v31 = vpop.f32.mrf.mxu0 }
 0x164   :  { %v404_v62 = vadd.f32 %v403_v13, %v225_v31 }
 0x167   :  { %v1170_v32 = vpop.f32.mrf.mxu0  ;;  %v1254_v33 = vpop.f32.mrf.mxu1 }
 0x168   :  { %v422_v2 = vadd.f32 %v1200_v16, %v1170_v32 }
 0x169   :  { %v245_v34 = vpop.f32.mrf.mxu0  ;;  %v654_v40 = vpop.f32.mrf.mxu1 }
 0x16a   :  { %v416_v1 = vadd.f32 %v415_v26, %v245_v34 }
 0x16d   :  { %v1173_v41 = vpop.f32.mrf.mxu0  ;;  %v1257_v46 = vpop.f32.mrf.mxu1 }
 0x16e   :  { %v434_v45 = vadd.f32 %v1203_v28, %v1173_v41 }
 0x16f   :  { %v265_v49 = vpop.f32.mrf.mxu0  ;;  %v670_v50 = vpop.f32.mrf.mxu1 }
 0x170   :  { %v428_v10 = vadd.f32 %v427_v30, %v265_v49 }
 0x173   :  { %v1260_v53 = vpop.f32.mrf.mxu1 }
 0x174   :  { %v1224_v54 = vpop.f32.mrf.mxu0 }
 0x175   :  { %v686_v5 = vpop.f32.mrf.mxu1  ;;  %v531_v52 = vadd.f32 %v1224_v54, %v398_v38 }
 0x176   :  { %v523_v57 = vpop.f32.mrf.mxu0 }
 0x177   :  { %v524_v60 = vadd.f32 %v523_v57, %v392_v48  ;;  %v663_v0 = vadd.f32 %v1254_v33, %v531_v52 }
 0x179   :  { %v1263_v9 = vpop.f32.mrf.mxu1  ;;  %v655_v15 = vadd.f32 %v654_v40, %v524_v60 }
 0x17a   :  { %v1227_v6 = vpop.f32.mrf.mxu0 }
 0x17b   :  { %v1748_v19 = vpop.f32.mrf.mxu1  ;;  %v545_v63 = vadd.f32 %v1227_v6, %v410_v59 }
 0x17c   :  { %v537_v18 = vpop.f32.mrf.mxu0 }
 0x17d   :  { %v538_v8 = vadd.f32 %v537_v18, %v404_v62  ;;  %v679_v44 = vadd.f32 %v1257_v46, %v545_v63 }
 0x17f   :  { %v671_v25 = vadd.f32 %v670_v50, %v538_v8 }
 0x180   :  { %v1230_v20 = vpop.f32.mrf.mxu0 }
 0x181   :  { %v559_v4 = vadd.f32 %v1230_v20, %v422_v2 }
 0x182   :  { %v1314_v21 = vpop.f32.mrf.mxu1  ;;  %v551_v35 = vpop.f32.mrf.mxu0 }
 0x183   :  { %v552_v22 = vadd.f32 %v551_v35, %v416_v1  ;;  %v695_v12 = vadd.f32 %v1260_v53, %v559_v4 }
 0x184   :  { %v930_v39 = vpop.f32.mrf.mxu1 }
 0x185   :  { %v1233_v47 = vpop.f32.mrf.mxu0  ;;  %v687_v31 = vadd.f32 %v686_v5, %v552_v22 }
 0x186   :  { %v573_v13 = vadd.f32 %v1233_v47, %v434_v45 }
 0x187   :  { %v1317_v58 = vpop.f32.mrf.mxu1  ;;  %v565_v61 = vpop.f32.mrf.mxu0 }
 0x188   :  { %v566_v32 = vadd.f32 %v565_v61, %v428_v10  ;;  %v711_v49 = vadd.f32 %v1263_v9, %v573_v13 }
 0x189   :  { %v942_v3 = vpop.f32.mrf.mxu1 }
 0x18a   :  { %v703_v18 = vadd.f32 %v1748_v19, %v566_v32 }
 0x18b   :  { %v1284_v7 = vpop.f32.mrf.mxu0  ;;  %v1320_v51 = vpop.f32.mrf.mxu1 }
 0x18c   :  { %v815_v14 = vadd.f32 %v1284_v7, %v663_v0 }
 0x18d   :  { %v808_v37 = vpop.f32.mrf.mxu0  ;;  %v954_v27 = vpop.f32.mrf.mxu1 }
 0x18e   :  { %v937_v42 = vadd.f32 %v1314_v21, %v815_v14  ;;  %v809_v43 = vadd.f32 %v808_v37, %v655_v15 }
 0x18f   :  { %v1287_v23 = vpop.f32.mrf.mxu0  ;;  %v1323_v50 = vpop.f32.mrf.mxu1 }
 0x190   :  { %v978_v55 = vadd.f32 %v976_v36, %v937_v42  ;;  %v931_v56 = vadd.f32 %v930_v39, %v809_v43  ;;  %v827_v24 = vadd.f32 %v1287_v23, %v679_v44 }
 0x191   :  { %v820_v11 = vpop.f32.mrf.mxu0  ;;  %v966_v38 = vpop.f32.mrf.mxu1 }
 0x192   :  { %986 = vst [vmem:[#allocation5 + $0x8] sm:$0xff] %v978_v55  ;;  %v977_v16 = vadd.f32 %v976_v36, %v931_v56  ;;  %v949_v17 = vadd.f32 %v1317_v58, %v827_v24  ;;  %v821_v26 = vadd.f32 %v820_v11, %v671_v25 }
 0x193   :  { %v1290_v29 = vpop.f32.mrf.mxu0 }
 0x194   :  { %985 = vst [vmem:[#allocation5] sm:$0xff] %v977_v16  ;;  %v980_v28 = vadd.f32 %v976_v36, %v949_v17  ;;  %v943_v33 = vadd.f32 %v942_v3, %v821_v26  ;;  %v839_v34 = vadd.f32 %v1290_v29, %v695_v12 }
 0x195   :  { %v832_v40 = vpop.f32.mrf.mxu0 }
 0x196   :  { %988 = vst [vmem:[#allocation5 + $0x18] sm:$0xff] %v980_v28  ;;  %v979_v41 = vadd.f32 %v976_v36, %v943_v33  ;;  %v961_v46 = vadd.f32 %v1320_v51, %v839_v34  ;;  %v833_v30 = vadd.f32 %v832_v40, %v687_v31 }
 0x197   :  { %v1293_v53 = vpop.f32.mrf.mxu0 }
 0x198   :  { %987 = vst [vmem:[#allocation5 + $0x10] sm:$0xff] %v979_v41  ;;  %v982_v54 = vadd.f32 %v976_v36, %v961_v46  ;;  %v955_v57 = vadd.f32 %v954_v27, %v833_v30  ;;  %v851_v6 = vadd.f32 %v1293_v53, %v711_v49 }
 0x199   :  { %v844_v5 = vpop.f32.mrf.mxu0 }
 0x19a   :  { %990 = vst [vmem:[#allocation5 + $0x28] sm:$0xff] %v982_v54  ;;  %v981_v20 = vadd.f32 %v976_v36, %v955_v57  ;;  %v973_v21 = vadd.f32 %v1323_v50, %v851_v6  ;;  %v845_v35 = vadd.f32 %v844_v5, %v703_v18 }
 0x19c   :  { %989 = vst [vmem:[#allocation5 + $0x20] sm:$0xff] %v981_v20  ;;  %v984_v39 = vadd.f32 %v976_v36, %v973_v21  ;;  %v967_v47 = vadd.f32 %v966_v38, %v845_v35 }
 0x19e   :  { %992 = vst [vmem:[#allocation5 + $0x38] sm:$0xff] %v984_v39  ;;  %v983_v9 = vadd.f32 %v976_v36, %v967_v47 }
 0x1a0   :  { %991 = vst [vmem:[#allocation5 + $0x30] sm:$0xff] %v983_v9 }
 0x1a1   :  { %1363 = shalt.err (!%p1360_p9)
}
 0x1a2   :  { %1004 = dma.vmem_to_hbm [thread:$0]  %s999_s8, 1024, %s1763_s3, [#allocation4], %s1377_s15, %s1377_s15, %s1378_s16  }
 0x1a3   :  { %1374 = dma.done.wait [#allocation4], 1024  }
 0x1a4   :  { %1375 = vsyncadd [#allocation4], 4294966272 }
 0x1a5   :  { %1008 = vsyncpa [#allocation3], 1 }
 0x1a6   :  { %1009 = vsyncpa [#allocation4], 1 }

</bundles_post_ra>
